<compile_context>
chip_gen: v6e
topology: v6e:2x2x1
jax: 0.10.0
libtpu: 0.0.40
codegen_flags: <defaults>
</compile_context>

<pallas_src>
import jax
import jax.numpy as jnp
from jax.experimental import pallas as pl
from jax.experimental.pallas import tpu as pltpu


# ----------------------------------------------------------------------------
# Pallas kernel: embedding lookup + one LSTM time-step + output projection
# ----------------------------------------------------------------------------
def lstm_step_kernel(ids_ref, h_ref, c_ref,
                     embed_ref, wcat_ref, bg_ref, wfc_ref, bfc_ref,
                     out_ref, h1_ref, c1_ref):
    B, H = h_ref.shape
    V = embed_ref.shape[0]

    # --- embedding lookup as a one-hot matmul (exact for integer ids) -------
    ids = ids_ref[...]                                            # (B, 1) int32
    vocab_iota = jax.lax.broadcasted_iota(jnp.int32, (B, V), 1)   # (B, V)
    onehot = (vocab_iota == ids).astype(jnp.float32)              # (B, V)
    x = jnp.dot(onehot, embed_ref[...],
                preferred_element_type=jnp.float32)               # (B, E)

    h = h_ref[...]                                                # (B, H)
    c = c_ref[...]                                                # (B, H)

    # --- single fused gate matmul: [x|h] @ [[W_ih^T],[W_hh^T]] + b ----------
    zh = jnp.concatenate([x, h], axis=1)                          # (B, E+H)
    gates = (jnp.dot(zh, wcat_ref[...],
                     preferred_element_type=jnp.float32)
             + bg_ref[...])                                       # (B, 4H)

    # PyTorch nn.LSTM gate order: input, forget, cell(g), output
    i_g = jax.nn.sigmoid(gates[:, 0 * H:1 * H])
    f_g = jax.nn.sigmoid(gates[:, 1 * H:2 * H])
    g_g = jnp.tanh(gates[:, 2 * H:3 * H])
    o_g = jax.nn.sigmoid(gates[:, 3 * H:4 * H])

    c1 = f_g * c + i_g * g_g
    h1 = o_g * jnp.tanh(c1)

    # --- lane-dense (padded) output projection ------------------------------
    logits = (jnp.dot(h1, wfc_ref[...],
                      preferred_element_type=jnp.float32)
              + bfc_ref[...])                                     # (B, O_pad)

    out_ref[...] = logits
    h1_ref[...] = h1
    c1_ref[...] = c1


def lstm_generator_step(ids2d, h0, c0, params):
    """ids2d: (B,1) int32; h0/c0: (B,H) -> (padded logits (B,O_pad), h1, c1)."""
    B, H = h0.shape
    O_pad = params["w_fc_pad"].shape[1]

    vmem_spec = pl.BlockSpec(memory_space=pltpu.MemorySpace.VMEM)

    out_shapes = (jax.ShapeDtypeStruct((B, O_pad), jnp.float32),
                  jax.ShapeDtypeStruct((B, H), jnp.float32),
                  jax.ShapeDtypeStruct((B, H), jnp.float32))

    return pl.pallas_call(
        lstm_step_kernel,
        out_shape=out_shapes,
        in_specs=[vmem_spec] * 8,
        out_specs=(vmem_spec, vmem_spec, vmem_spec),
        # in-place state update: h0 -> h1, c0 -> c1
        input_output_aliases={1: 1, 2: 2},
    )(ids2d, h0, c0,
      params["embed"], params["w_cat"], params["b_gates"],
      params["w_fc_pad"], params["b_fc_pad"])


# ----------------------------------------------------------------------------
# Glue matching the PyTorch forward semantics
# ----------------------------------------------------------------------------
def forward(features, hidden_and_cell_state, params, output_size):
    """features: int (B,) token ids; hidden_and_cell_state: (h, c) each (1,B,H)."""
    h0, c0 = hidden_and_cell_state
    B = features.shape[0]
    ids2d = features.reshape(B, 1).astype(jnp.int32)       # features.view(1,-1) + embed
    logits_pad, h1, c1 = lstm_generator_step(ids2d, h0[0], c0[0], params)
    logits = logits_pad[:, :output_size]                   # strip lane padding
    return logits, (h1[None, ...], c1[None, ...])


# ----------------------------------------------------------------------------
# Deterministic parameter init (same underlying shapes as the nn.Module),
# pre-fused / pre-transposed for the kernel.
# ----------------------------------------------------------------------------
def init_params(key, input_size, embed_size, hidden_size, output_size):
    ks = jax.random.split(key, 7)
    H = hidden_size
    s = 1.0 / jnp.sqrt(jnp.float32(H))

    embed = jax.random.normal(ks[0], (input_size, embed_size), jnp.float32)

    # PyTorch LSTM weights: W_ih (4H,E), W_hh (4H,H), b_ih/b_hh (4H,)  [i,f,g,o]
    w_ih = jax.random.uniform(ks[1], (4 * H, embed_size), jnp.float32, -s, s)
    w_hh = jax.random.uniform(ks[2], (4 * H, hidden_size), jnp.float32, -s, s)
    b_ih = jax.random.uniform(ks[3], (4 * H,), jnp.float32, -s, s)
    b_hh = jax.random.uniform(ks[4], (4 * H,), jnp.float32, -s, s)

    w_fc = jax.random.uniform(ks[5], (output_size, hidden_size), jnp.float32, -s, s)
    b_fc = jax.random.uniform(ks[6], (output_size,), jnp.float32, -s, s)

    # Fused gate weight: [x|h] @ [[W_ih^T],[W_hh^T]] -> (E+H, 4H); fused bias.
    w_cat = jnp.concatenate([jnp.transpose(w_ih), jnp.transpose(w_hh)], axis=0)
    b_gates = (b_ih + b_hh).reshape(1, 4 * H)

    # Lane-dense fc: pad output dim up to a multiple of 128 (>=128).
    o_pad = max(128, ((output_size + 127) // 128) * 128)
    w_fc_pad = jnp.zeros((hidden_size, o_pad), jnp.float32)
    w_fc_pad = w_fc_pad.at[:, :output_size].set(jnp.transpose(w_fc))
    b_fc_pad = jnp.zeros((1, o_pad), jnp.float32).at[:, :output_size].set(b_fc)

    return {"embed": embed, "w_cat": w_cat, "b_gates": b_gates,
            "w_fc_pad": w_fc_pad, "b_fc_pad": b_fc_pad}


# ----------------------------------------------------------------------------
# Pure-JAX reference (same fused params) for a correctness check
# ----------------------------------------------------------------------------
def reference_forward(features, h0, c0, params, output_size):
    H = h0.shape[-1]
    x = params["embed"][features]                          # (B, E)
    zh = jnp.concatenate([x, h0], axis=1)
    gates = zh @ params["w_cat"] + params["b_gates"]
    i_g = jax.nn.sigmoid(gates[:, 0 * H:1 * H])
    f_g = jax.nn.sigmoid(gates[:, 1 * H:2 * H])
    g_g = jnp.tanh(gates[:, 2 * H:3 * H])
    o_g = jax.nn.sigmoid(gates[:, 3 * H:4 * H])
    c1 = f_g * c0 + i_g * g_g
    h1 = o_g * jnp.tanh(c1)
    logits = h1 @ params["w_fc_pad"][:, :output_size] + params["b_fc_pad"][0, :output_size]
    return logits, h1, c1


if __name__ == "__main__":
    # Small shapes consistent with the module
    input_size = 24      # vocab size
    embed_size = 32
    hidden_size = 32
    output_size = 24
    batch_size = 8
    num_layers = 1

    key = jax.random.PRNGKey(0)
    k_param, k_feat = jax.random.split(key)

    params = init_params(k_param, input_size, embed_size, hidden_size, output_size)

    features = jax.random.randint(k_feat, (batch_size,), 0, input_size, dtype=jnp.int32)
    # init_zero_state()
    h0 = jnp.zeros((num_layers, batch_size, hidden_size), jnp.float32)
    c0 = jnp.zeros((num_layers, batch_size, hidden_size), jnp.float32)

    # Reference (computed first, before the aliased/donatable kernel call)
    ref_logits, ref_h1, ref_c1 = reference_forward(features, h0[0], c0[0],
                                                   params, output_size)
    jax.block_until_ready((ref_logits, ref_h1, ref_c1))

    logits, (h1, c1) = forward(features, (h0, c0), params, output_size)
    jax.block_until_ready((logits, h1, c1))

    assert logits.shape == (batch_size, output_size)
    assert h1.shape == (num_layers, batch_size, hidden_size)
    assert c1.shape == (num_layers, batch_size, hidden_size)
    assert float(jnp.max(jnp.abs(logits - ref_logits))) < 2e-3
    assert float(jnp.max(jnp.abs(h1[0] - ref_h1))) < 2e-3
    assert float(jnp.max(jnp.abs(c1[0] - ref_c1))) < 2e-3
    print("KERNEL_OK")
</pallas_src>

<mosaic_0001>
module attributes {stable_mosaic.version = 11 : i64} {
  func.func @lstm_step_kernel(%arg0: memref<8x1xi32, #tpu.memory_space<vmem>>, %arg1: memref<8x32xf32, #tpu.memory_space<vmem>>, %arg2: memref<8x32xf32, #tpu.memory_space<vmem>>, %arg3: memref<24x32xf32, #tpu.memory_space<vmem>>, %arg4: memref<64x128xf32, #tpu.memory_space<vmem>>, %arg5: memref<1x128xf32, #tpu.memory_space<vmem>>, %arg6: memref<32x128xf32, #tpu.memory_space<vmem>>, %arg7: memref<1x128xf32, #tpu.memory_space<vmem>>, %arg8: memref<8x128xf32, #tpu.memory_space<vmem>>, %arg9: memref<8x32xf32, #tpu.memory_space<vmem>>, %arg10: memref<8x32xf32, #tpu.memory_space<vmem>>) attributes {dimension_semantics = [], scalar_prefetch = 0 : i64, scratch_operands = 0 : i64, tpu.core_type = #tpu.core_type<tc>} {
    %c0 = arith.constant 0 : index
    %c0_0 = arith.constant 0 : index
    %0 = vector.load %arg0[%c0, %c0_0] : memref<8x1xi32, #tpu.memory_space<vmem>>, vector<8x1xi32>
    %1 = tpu.iota {dimensions = array<i32: 1>} : vector<8x24xi32>
    %2 = vector.broadcast %0 : vector<8x1xi32> to vector<8x24xi32>
    %3 = arith.cmpi eq, %1, %2 : vector<8x24xi32>
    %4 = arith.extui %3 : vector<8x24xi1> to vector<8x24xi32>
    %5 = arith.sitofp %4 : vector<8x24xi32> to vector<8x24xf32>
    %c0_1 = arith.constant 0 : index
    %c0_2 = arith.constant 0 : index
    %6 = vector.load %arg3[%c0_1, %c0_2] : memref<24x32xf32, #tpu.memory_space<vmem>>, vector<24x32xf32>
    %cst = arith.constant dense<0.000000e+00> : vector<8x32xf32>
    %7 = tpu.matmul %5, %6, %cst {dimension_numbers = #tpu.dot_dimension_numbers<[1], [0], [0], [1], [0, 0, 1, 1], [], []>} : vector<8x24xf32>, vector<24x32xf32>, vector<8x32xf32> -> vector<8x32xf32>
    %c0_3 = arith.constant 0 : index
    %c0_4 = arith.constant 0 : index
    %8 = vector.load %arg1[%c0_3, %c0_4] : memref<8x32xf32, #tpu.memory_space<vmem>>, vector<8x32xf32>
    %c0_5 = arith.constant 0 : index
    %c0_6 = arith.constant 0 : index
    %9 = vector.load %arg2[%c0_5, %c0_6] : memref<8x32xf32, #tpu.memory_space<vmem>>, vector<8x32xf32>
    %10 = tpu.concatenate %7, %8 in 1 : vector<8x32xf32>, vector<8x32xf32> -> vector<8x64xf32>
    %c0_7 = arith.constant 0 : index
    %c0_8 = arith.constant 0 : index
    %11 = vector.load %arg4[%c0_7, %c0_8] : memref<64x128xf32, #tpu.memory_space<vmem>>, vector<64x128xf32>
    %cst_9 = arith.constant dense<0.000000e+00> : vector<8x128xf32>
    %12 = tpu.matmul %10, %11, %cst_9 {dimension_numbers = #tpu.dot_dimension_numbers<[1], [0], [0], [1], [0, 0, 1, 1], [], []>} : vector<8x64xf32>, vector<64x128xf32>, vector<8x128xf32> -> vector<8x128xf32>
    %c0_10 = arith.constant 0 : index
    %c0_11 = arith.constant 0 : index
    %13 = vector.load %arg5[%c0_10, %c0_11] : memref<1x128xf32, #tpu.memory_space<vmem>>, vector<1x128xf32>
    %14 = vector.broadcast %13 : vector<1x128xf32> to vector<8x128xf32>
    %15 = arith.addf %12, %14 : vector<8x128xf32>
    %16 = vector.extract_strided_slice %15 {offsets = [0, 0], sizes = [8, 32], strides = [1, 1]} : vector<8x128xf32> to vector<8x32xf32>
    %17 = arith.negf %16 : vector<8x32xf32>
    %18 = math.exp %17 : vector<8x32xf32>
    %cst_12 = arith.constant 1.000000e+00 : f32
    %19 = vector.broadcast %cst_12 : f32 to vector<8x32xf32>
    %20 = arith.addf %19, %18 : vector<8x32xf32>
    %21 = arith.divf %19, %20 : vector<8x32xf32>
    %22 = vector.extract_strided_slice %15 {offsets = [0, 32], sizes = [8, 32], strides = [1, 1]} : vector<8x128xf32> to vector<8x32xf32>
    %23 = arith.negf %22 : vector<8x32xf32>
    %24 = math.exp %23 : vector<8x32xf32>
    %cst_13 = arith.constant 1.000000e+00 : f32
    %25 = vector.broadcast %cst_13 : f32 to vector<8x32xf32>
    %26 = arith.addf %25, %24 : vector<8x32xf32>
    %27 = arith.divf %25, %26 : vector<8x32xf32>
    %28 = vector.extract_strided_slice %15 {offsets = [0, 64], sizes = [8, 32], strides = [1, 1]} : vector<8x128xf32> to vector<8x32xf32>
    %29 = math.tanh %28 : vector<8x32xf32>
    %30 = vector.extract_strided_slice %15 {offsets = [0, 96], sizes = [8, 32], strides = [1, 1]} : vector<8x128xf32> to vector<8x32xf32>
    %31 = arith.negf %30 : vector<8x32xf32>
    %32 = math.exp %31 : vector<8x32xf32>
    %cst_14 = arith.constant 1.000000e+00 : f32
    %33 = vector.broadcast %cst_14 : f32 to vector<8x32xf32>
    %34 = arith.addf %33, %32 : vector<8x32xf32>
    %35 = arith.divf %33, %34 : vector<8x32xf32>
    %36 = arith.mulf %27, %9 : vector<8x32xf32>
    %37 = arith.mulf %21, %29 : vector<8x32xf32>
    %38 = arith.addf %36, %37 : vector<8x32xf32>
    %39 = math.tanh %38 : vector<8x32xf32>
    %40 = arith.mulf %35, %39 : vector<8x32xf32>
    %c0_15 = arith.constant 0 : index
    %c0_16 = arith.constant 0 : index
    %41 = vector.load %arg6[%c0_15, %c0_16] : memref<32x128xf32, #tpu.memory_space<vmem>>, vector<32x128xf32>
    %cst_17 = arith.constant dense<0.000000e+00> : vector<8x128xf32>
    %42 = tpu.matmul %40, %41, %cst_17 {dimension_numbers = #tpu.dot_dimension_numbers<[1], [0], [0], [1], [0, 0, 1, 1], [], []>} : vector<8x32xf32>, vector<32x128xf32>, vector<8x128xf32> -> vector<8x128xf32>
    %c0_18 = arith.constant 0 : index
    %c0_19 = arith.constant 0 : index
    %43 = vector.load %arg7[%c0_18, %c0_19] : memref<1x128xf32, #tpu.memory_space<vmem>>, vector<1x128xf32>
    %44 = vector.broadcast %43 : vector<1x128xf32> to vector<8x128xf32>
    %45 = arith.addf %42, %44 : vector<8x128xf32>
    %c0_20 = arith.constant 0 : index
    %c0_21 = arith.constant 0 : index
    %46 = vector.load %arg8[%c0_20, %c0_21] : memref<8x128xf32, #tpu.memory_space<vmem>>, vector<8x128xf32>
    tpu.vector_store %arg8[%c0_20, %c0_21], %45 {strides = array<i32>} : memref<8x128xf32, #tpu.memory_space<vmem>>, vector<8x128xf32>,
    %c0_22 = arith.constant 0 : index
    %c0_23 = arith.constant 0 : index
    %47 = vector.load %arg9[%c0_22, %c0_23] : memref<8x32xf32, #tpu.memory_space<vmem>>, vector<8x32xf32>
    tpu.vector_store %arg9[%c0_22, %c0_23], %40 {strides = array<i32>} : memref<8x32xf32, #tpu.memory_space<vmem>>, vector<8x32xf32>,
    %c0_24 = arith.constant 0 : index
    %c0_25 = arith.constant 0 : index
    %48 = vector.load %arg10[%c0_24, %c0_25] : memref<8x32xf32, #tpu.memory_space<vmem>>, vector<8x32xf32>
    tpu.vector_store %arg10[%c0_24, %c0_25], %38 {strides = array<i32>} : memref<8x32xf32, #tpu.memory_space<vmem>>, vector<8x32xf32>,
    return
  }
}

</mosaic_0001>

<bundles_post_ra>
// kernel: tpu_custom_call.1
= control target key start
LH: loop header
LB: loop body
LE: loop exit
PB: predicated region body
PF: predicated region fallthrough
CT: control target
= control target key end

     0   :  { %16 = vsyncpa [#allocation3], 0  ;;  %s814_s0 = inlined_call_operand.vmem [shape: s32[8,1], index: 0, kind: input, shape index: {}]   ;;  %s815_s1 = inlined_call_operand.hbm [shape: f32[8,32], index: 1, kind: input, shape index: {}, may-alias: {1,9}]   ;;  %s816_s2 = inlined_call_operand.hbm [shape: f32[8,32], index: 2, kind: input, shape index: {}, may-alias: {2,10}]   ;;  %s817_s3 = inlined_call_operand.hbm [shape: f32[24,32], index: 3, kind: input, shape index: {}]   ;;  %s818_s4 = inlined_call_operand.hbm [shape: f32[64,128], index: 4, kind: input, shape index: {}]   ;;  %s819_s5 = inlined_call_operand.vmem [shape: f32[1,128], index: 5, kind: input, shape index: {}]   ;;  %s820_s6 = inlined_call_operand.vmem [shape: f32[32,128], index: 6, kind: input, shape index: {}]   ;;  %s821_s7 = inlined_call_operand.vmem [shape: f32[1,128], index: 7, kind: input, shape index: {}]   ;;  %s822_s8 = inlined_call_operand.hbm [shape: f32[8,128], index: 8, kind: output, shape index: {0}]   ;;  %s823_s9 = inlined_call_operand.hbm [shape: f32[8,32], index: 9, kind: output, shape index: {1}, may-alias: {1,9}]   ;;  %s824_s10 = inlined_call_operand.hbm [shape: f32[8,32], index: 10, kind: output, shape index: {2}, may-alias: {2,10}]  }
   0x1   :  { %17 = vsyncpa [#allocation6], 0 }
   0x2   :  { %18 = vsyncpa [#allocation9], 0 }
   0x3   :  { %19 = vsyncpa [#allocation4], 0 }
   0x4   :  { %20 = vsyncpa [#allocation12], 0  ;;  %s672_s13 = smov [#allocation5]   ;;  %s673_s15 = smov [#allocation2]  }
   0x5   :  { %s39_s14 = sshll.u32 %s672_s13, 4  ;;  %s29_s16 = sshll.u32 %s673_s15, 4  ;;  %s40_s14 = int_to_ptr.vmem [resolvable:$true] %s39_s14  ;;  %s30_s16 = int_to_ptr.vmem [resolvable:$true] %s29_s16 }
   0x6   :  { %s530_s17 = scalar_lea.vmem %s40_s14, 128  ;;  %p535_p1 = scmp.lt.s32.totalorder %s40_s14, %s40_s14 }
   0x7   :  { %p531_p0 = scmp.ne.s32.totalorder %s40_s14, %s530_s17  ;;  %p536_p2 = scmp.lt.s32.totalorder %s530_s17, %s530_s17 }
   0x9   :  { %p537_p3 = por %p536_p2, %p535_p1 }
   0xb   :  { %p538_p4 = pnand %p537_p3, %p531_p0 }
   0xd   :  { %541 = shalt.err (!%p538_p4)
}
   0xe   :  { %42 = dma.hbm_to_vmem [thread:$0]  %s816_s2, 128, %s40_s14, [#allocation6]  }
   0xf   :  { %s550_s20 = scalar_lea.vmem %s30_s16, 128  ;;  %p555_p6 = scmp.lt.s32.totalorder %s30_s16, %s30_s16 }
  0x10   :  { %p551_p5 = scmp.ne.s32.totalorder %s30_s16, %s550_s20  ;;  %p556_p7 = scmp.lt.s32.totalorder %s550_s20, %s550_s20 }
  0x12   :  { %p557_p8 = por %p556_p7, %p555_p6 }
  0x14   :  { %p558_p9 = pnand %p557_p8, %p551_p5 }
  0x16   :  { %561 = shalt.err (!%p558_p9)
}
  0x17   :  { %32 = dma.hbm_to_vmem [thread:$0]  %s815_s1, 128, %s30_s16, [#allocation3]  }
  0x18   :  { %s674_s23 = smov [#allocation7]  }
  0x19   :  { %s48_s24 = sshll.u32 %s674_s23, 4  ;;  %s49_s24 = int_to_ptr.vmem [resolvable:$true] %s48_s24 }
  0x1a   :  { %s570_s25 = scalar_lea.vmem %s49_s24, 384  ;;  %p575_p11 = scmp.lt.s32.totalorder %s49_s24, %s49_s24 }
  0x1b   :  { %p571_p10 = scmp.ne.s32.totalorder %s49_s24, %s570_s25  ;;  %p576_p12 = scmp.lt.s32.totalorder %s570_s25, %s570_s25 }
  0x1d   :  { %p577_p13 = por %p576_p12, %p575_p11 }
  0x1f   :  { %p578_p0 = pnand %p577_p13, %p571_p10 }
  0x21   :  { %581 = shalt.err (!%p578_p0)
}
  0x22   :  { %s675_s2 = smov 128   ;;  %s676_s26 = smov 8  }
  0x23   :  { %54 = dma.hbm_to_vmem [thread:$0]  %s817_s3, 384, %s49_s24, [#allocation6], %s675_s2, %s675_s2, %s676_s26  }
  0x24   :  { %s677_s29 = smov [#allocation8]  }
  0x25   :  { %s60_s30 = sshll.u32 %s677_s29, 4  ;;  %s61_s30 = int_to_ptr.vmem [resolvable:$true] %s60_s30 }
  0x26   :  { %s590_s1 = scalar_lea.vmem %s61_s30, 1024  ;;  %p595_p2 = scmp.lt.s32.totalorder %s61_s30, %s61_s30 }
  0x27   :  { %p591_p1 = scmp.ne.s32.totalorder %s61_s30, %s590_s1  ;;  %p596_p3 = scmp.lt.s32.totalorder %s590_s1, %s590_s1 }
  0x29   :  { %p597_p4 = por %p596_p3, %p595_p2 }
  0x2b   :  { %p598_p5 = pnand %p597_p4, %p591_p1 }
  0x2d   :  { %601 = shalt.err (!%p598_p5)
}
  0x2e   :  { %66 = dma.hbm_to_vmem [thread:$0]  %s818_s4, 1024, %s61_s30, [#allocation9], %s675_s2, %s675_s2, %s676_s26  }
  0x2f   :  { %662 = dma.done.wait [#allocation3], 128  }
  0x30   :  { %663 = vsyncadd [#allocation3], 4294967168 }
  0x31   :  { %664 = dma.done.wait [#allocation6], 512  }
  0x32   :  { %665 = vsyncadd [#allocation6], 4294966784 }
  0x33   :  { %666 = dma.done.wait [#allocation9], 1024  }
  0x34   :  { %667 = vsyncadd [#allocation9], 4294966272  ;;  %v678_v0 = vmov 0   ;;  %v679_v1 = vmov 0.0   ;;  %vm680_vm0 = vmmov 0   ;;  %v85_v2 = vld [vmem:[%s814_s0] sm:$0xff]  ;;  %v86_v14 = vlaneseq }
  0x35   :  { %513 = vset.pattern.permute.xlu0 %v678_v0  ;;  %459 = vmatprep.subr.mxu0 %v679_v1  ;;  %v96_v3 = vld [vmem:[#allocation7 + $0x10] sm:$0xff]  ;;  %v95_v4 = vld [vmem:[#allocation7 + $0x8] sm:$0xff]  ;;  %v94_v6 = vld [vmem:[#allocation7] sm:$0xff]  ;;  %s681_s0 = smov 32   ;;  %vm97_vm1 = vcmask 195584   ;;  %vm177_vm3 = vcmask 261120  }
  0x36   :  { %468 = vmatprep.subr.mxu1 %v679_v1  ;;  %465 = vmatprep.mubr.msk.f32.mxu0 %vm680_vm0, %v679_v1  ;;  %v186_v5 = vld [vmem:[#allocation8 + $0x38] sm:$0xff]  ;;  %v185_v8 = vld [vmem:[#allocation8 + $0x30] sm:$0xff]  ;;  %v184_v9 = vld [vmem:[#allocation8 + $0x28] sm:$0xff]  ;;  %v87_v15 = vand.u32 127, %v86_v14  ;;  %vm194_vm4 = vcmask 523264   ;;  %s682_s15 = smov 64  }
  0x37   :  { %484 = vmatprep.mubr.msk.f32.mxu1 %vm680_vm0, %v679_v1  ;;  %89 = vperm.xlu0 %513, %v85_v2   ;;  %v171_v7 = vld [vmem:[#allocation2] sm:$0xff]  ;;  %v183_v10 = vld [vmem:[#allocation8 + $0x20] sm:$0xff]  ;;  %v181_v12 = vld [vmem:[#allocation8 + $0x10] sm:$0xff]  ;;  %s683_s23 = smov 96  }
  0x38   :  { %460 = vmatpush3.msra.mxu0 %v96_v3  ;;  %469 = vmatpush3.msra.mxu1 %v186_v5  ;;  %v182_v11 = vld [vmem:[#allocation8 + $0x18] sm:$0xff]  ;;  %v180_v13 = vld [vmem:[#allocation8 + $0x8] sm:$0xff]  ;;  %v179_v18 = vld [vmem:[#allocation8] sm:$0xff] }
  0x39   :  { %461 = vmatprep.subr.mxu0 %v679_v1  ;;  %470 = vmatprep.subr.mxu1 %v679_v1  ;;  %v436_v23 = vld [vmem:[%s819_s5] ss:$0 sm:$0xff]  ;;  %v172_v28 = vld [vmem:[#allocation5] sm:$0xff]  ;;  %v299_v39 = vld [vmem:[%s820_s6 + $0x18] sm:$0xff] }
  0x3a   :  { %462 = vmatpush3.msra.mxu0 %v95_v4  ;;  %471 = vmatpush3.msra.mxu1 %v185_v8  ;;  %v298_v40 = vld [vmem:[%s820_s6 + $0x10] sm:$0xff]  ;;  %v297_v41 = vld [vmem:[%s820_s6 + $0x8] sm:$0xff]  ;;  %v296_v42 = vld [vmem:[%s820_s6] sm:$0xff]  ;;  %s684_s6 = smov [#allocation11]  }
  0x3b   :  { %463 = vmatprep.subr.mxu0 %v679_v1  ;;  %174 = vrot.lane.b32.xlu0 %v171_v7, %s681_s0  ;;  %s406_s24 = sshll.u32 %s684_s6, 4  ;;  %s407_s24 = int_to_ptr.vmem [resolvable:$true] %s406_s24 }
  0x3c   :  { %464 = vmatpush3.msra.mxu0 %v94_v6  ;;  %472 = vmatprep.subr.mxu1 %v679_v1  ;;  %s602_s25 = scalar_lea.vmem %s407_s24, 128  ;;  %p607_p7 = scmp.lt.s32.totalorder %s407_s24, %s407_s24 }
  0x3d   :  { %487 = vmatprep.subr.mxu0 %v679_v1  ;;  %473 = vmatpush3.msra.mxu1 %v184_v9  ;;  %p603_p6 = scmp.ne.s32.totalorder %s407_s24, %s602_s25  ;;  %p608_p8 = scmp.lt.s32.totalorder %s602_s25, %s602_s25 }
  0x3e   :  { %474 = vmatprep.subr.mxu1 %v679_v1 }
  0x3f   :  { %475 = vmatpush3.msra.mxu1 %v183_v10  ;;  %p609_p9 = por %p608_p8, %p607_p7 }
  0x40   :  { %476 = vmatprep.subr.mxu1 %v679_v1 }
  0x41   :  { %477 = vmatpush3.msra.mxu1 %v182_v11  ;;  %p610_p10 = pnand %p609_p9, %p603_p6 }
  0x42   :  { %478 = vmatprep.subr.mxu1 %v679_v1 }
  0x43   :  { %479 = vmatpush3.msra.mxu1 %v181_v12 }
  0x44   :  { %480 = vmatprep.subr.mxu1 %v679_v1 }
  0x45   :  { %481 = vmatpush3.msra.mxu1 %v180_v13 }
  0x46   :  { %482 = vmatprep.subr.mxu1 %v679_v1 }
  0x47   :  { %483 = vmatpush3.msra.mxu1 %v179_v18 }
  0xb2   :  { %v90_v16 = vpop.permute.xlu0 %89 }
  0xb3   :  { %vm91_vm2 = vcmp.eq.s32.totalorder %v87_v15, %v90_v16 }
  0xb4   :  { %v434_v17 = vsel %vm91_vm2, 1.0, %v679_v1 }
  0xb5   :  { %466 = vmatmul.mubr.msk.f32.vlgmr.msra.gmra.mxu0 %vm97_vm1, %v434_v17 }
  0xb6   :  { %495 = vmatprep.mubr.msk.f32.mxu0 %vm680_vm0, %v679_v1  ;;  %v175_v19 = vpop.permute.xlu0 %174  ;;  %488 = vmatpush3.msra.mxu0 %v299_v39 }
  0xb7   :  { %489 = vmatprep.subr.mxu0 %v679_v1 }
  0xb8   :  { %490 = vmatpush3.msra.mxu0 %v298_v40 }
  0xb9   :  { %491 = vmatprep.subr.mxu0 %v679_v1 }
  0xba   :  { %492 = vmatpush3.msra.mxu0 %v297_v41 }
  0xbb   :  { %493 = vmatprep.subr.mxu0 %v679_v1 }
  0xbc   :  { %494 = vmatpush3.msra.mxu0 %v296_v42 }
 0x175   :  { %v167_v20 = vpop.f32.mrf.mxu0 }
 0x176   :  { %v178_v21 = vsel %vm177_vm3, %v167_v20, %v175_v19 }
 0x177   :  { %v467_v22 = vpop.f32.mrf.mxu0  ;;  %485 = vmatmul.mubr.msk.f32.vlgmr.msra.gmra.mxu1 %vm194_vm4, %v178_v21 }
 0x237   :  { %v264_v24 = vpop.f32.mrf.mxu1 }
 0x238   :  { %v265_v25 = vadd.f32 %v436_v23, %v264_v24 }
 0x239   :  { %v486_v26 = vpop.f32.mrf.mxu1 }
 0x23a   :  { %514 = vtanh.f32 %v265_v25  ;;  %v438_v29 = vmul.f32 -1.442695, %v265_v25 }
 0x23c   :  { %516 = vpow2.f32 %v438_v29 }
 0x247   :  { %v515_v27 = vpop.eup %514 }
 0x248   :  { %281 = vrot.lane.b32.xlu1 %v515_v27, %s682_s15 }
 0x249   :  { %v517_v30 = vpop.eup %516 }
 0x24a   :  { %v271_v31 = vadd.f32 1.0, %v517_v30 }
 0x24c   :  { %276 = vrot.lane.b32.xlu1 %v172_v28, %s681_s0  ;;  %518 = vrcp.f32 %v271_v31 }
 0x259   :  { %v519_v32 = vpop.eup %518 }
 0x2ba   :  { %v282_v33 = vpop.permute.xlu1 %281 }
 0x2bb   :  { %v284_v34 = vmul.f32 %v519_v32, %v282_v33 }
 0x2bd   :  { %286 = vrot.lane.b32.xlu0 %v284_v34, %s681_s0 }
 0x2be   :  { %v277_v35 = vpop.permute.xlu1 %276 }
 0x2bf   :  { %v279_v36 = vmul.f32 %v519_v32, %v277_v35 }
 0x32f   :  { %v287_v37 = vpop.permute.xlu0 %286 }
 0x330   :  { %v289_v38 = vadd.f32 %v287_v37, %v279_v36 }
 0x332   :  { %520 = vtanh.f32 %v289_v38 }
 0x33f   :  { %v521_v43 = vpop.eup %520 }
 0x340   :  { %292 = vrot.lane.b32.xlu1 %v521_v43, %s682_s15 }
 0x344   :  { %386 = vrot.lane.b32.xlu1 %v289_v38, %s683_s23 }
 0x3b2   :  { %v293_v44 = vpop.permute.xlu1 %292 }
 0x3b3   :  { %v295_v45 = vmul.f32 %v519_v32, %v293_v44 }
 0x3b5   :  { %308 = vrot.lane.b32.xlu0 %v295_v45, %s681_s0 }
 0x3b6   :  { %v387_v46 = vpop.permute.xlu1 %386 }
 0x3b7   :  { %389 = vst.msk [vmem:[#allocation13] sm:$0xff] %vm177_vm3, %v387_v46 }
 0x427   :  { %v309_v47 = vpop.permute.xlu0 %308 }
 0x428   :  { %384 = vst.msk [vmem:[#allocation11] sm:$0xff] %vm177_vm3, %v309_v47  ;;  %496 = vmatmul.mubr.msk.f32.vlgmr.msra.gmra.mxu0 %vm177_vm3, %v309_v47 }
 0x429   :  { %613 = shalt.err (!%p610_p10)
}
 0x42a   :  { %409 = dma.vmem_to_hbm [thread:$0]  %s407_s24, 128, %s823_s9, [#allocation12]  }
 0x42b   :  { %s685_s27 = smov [#allocation13]  }
 0x42c   :  { %s416_s28 = sshll.u32 %s685_s27, 4  ;;  %s417_s28 = int_to_ptr.vmem [resolvable:$true] %s416_s28 }
 0x42d   :  { %s622_s29 = scalar_lea.vmem %s417_s28, 128  ;;  %p627_p12 = scmp.lt.s32.totalorder %s417_s28, %s417_s28 }
 0x42e   :  { %p623_p11 = scmp.ne.s32.totalorder %s417_s28, %s622_s29  ;;  %p628_p13 = scmp.lt.s32.totalorder %s622_s29, %s622_s29 }
 0x430   :  { %p629_p0 = por %p628_p13, %p627_p12 }
 0x432   :  { %p630_p1 = pnand %p629_p0, %p623_p11 }
 0x434   :  { %633 = shalt.err (!%p630_p1)
}
 0x435   :  { %419 = dma.vmem_to_hbm [thread:$0]  %s417_s28, 128, %s824_s10, [#allocation12]   ;;  %v439_v48 = vld [vmem:[%s821_s7] ss:$0 sm:$0xff] }
 0x436   :  { %s686_s3 = smov [#allocation10]  }
 0x437   :  { %s396_s9 = sshll.u32 %s686_s3, 4  ;;  %s397_s9 = int_to_ptr.vmem [resolvable:$true] %s396_s9 }
 0x438   :  { %s642_s4 = scalar_lea.vmem %s397_s9, 128  ;;  %p647_p3 = scmp.lt.s32.totalorder %s397_s9, %s397_s9 }
 0x439   :  { %p643_p2 = scmp.ne.s32.totalorder %s397_s9, %s642_s4  ;;  %p648_p4 = scmp.lt.s32.totalorder %s642_s4, %s642_s4 }
 0x43b   :  { %p649_p5 = por %p648_p4, %p647_p3 }
 0x43d   :  { %p650_p6 = pnand %p649_p5, %p643_p2 }
 0x4e8   :  { %v378_v49 = vpop.f32.mrf.mxu0 }
 0x4e9   :  { %v379_v50 = vadd.f32 %v439_v48, %v378_v49 }
 0x4ea   :  { %v497_v51 = vpop.f32.mrf.mxu0 }
 0x4eb   :  { %382 = vst [vmem:[#allocation10] sm:$0xff] %v379_v50 }
 0x4ec   :  { %653 = shalt.err (!%p650_p6)
}
 0x4ed   :  { %399 = dma.vmem_to_hbm [thread:$0]  %s397_s9, 128, %s822_s8, [#allocation4]  }
 0x4ee   :  { %668 = dma.done.wait [#allocation4], 128  }
 0x4ef   :  { %669 = vsyncadd [#allocation4], 4294967168 }
 0x4f0   :  { %670 = dma.done.wait [#allocation12], 256  }
 0x4f1   :  { %671 = vsyncadd [#allocation12], 4294967040 }
 0x4f2   :  { %429 = vsyncpa [#allocation3], 1 }
 0x4f3   :  { %430 = vsyncpa [#allocation6], 1 }
 0x4f4   :  { %431 = vsyncpa [#allocation9], 1 }
 0x4f5   :  { %432 = vsyncpa [#allocation4], 1 }
 0x4f6   :  { %433 = vsyncpa [#allocation12], 1 }

</bundles_post_ra>
